<compile_context>
chip_gen: v5e
topology: v5e:2x2
jax: 0.10.0
libtpu: 0.0.40
codegen_flags: <defaults>
</compile_context>

<pallas_src>
import jax
import jax.numpy as jnp
from jax.experimental import pallas as pl
from jax.experimental.pallas import tpu as pltpu


def _round_up(v, m):
    return ((v + m - 1) // m) * m


def _net_kernel(x_ref, w1_ref, b1_ref, w2_ref, b2_ref, o_ref):
    # x : (rows_tile, P*n_states)    batch packed into lanes, lane-dense loads
    # w1: (P*n_states, P*hidden)     block-diagonal kron(I_P, fc1.weight.T), VMEM-resident
    # b1: (1, P*hidden)              bias tiled P times, broadcasts along sublanes
    # w2: (P*hidden, P*n_actions)    block-diagonal kron(I_P, out.weight.T)
    # b2: (1, P*n_actions)
    # o : (rows_tile, P*n_actions)   lane-dense (128-wide) unmasked stores
    h = jnp.dot(x_ref[...], w1_ref[...], preferred_element_type=jnp.float32)
    h = jnp.maximum(h + b1_ref[...], 0.0)                    # fc1 bias + ReLU
    out = jnp.dot(h, w2_ref[...], preferred_element_type=jnp.float32)
    o_ref[...] = (out + b2_ref[...]).astype(o_ref.dtype)     # out bias


def net_forward(x, w1, b1, w2, b2, *, pack=64, max_rows_tile=1024):
    """Forward pass of Net.

    x:  (B, n_states) f32                 (PyTorch Linear input layout)
    w1: (hidden, n_states)  fc1.weight    (PyTorch (out, in) layout)
    b1: (hidden,)           fc1.bias
    w2: (n_actions, hidden) out.weight
    b2: (n_actions,)        out.bias
    returns (B, n_actions)
    """
    B, n_states = x.shape
    hidden = w1.shape[0]
    n_actions = w2.shape[0]
    P = pack

    # ---- packed-row tiling ---------------------------------------------------
    R = pl.cdiv(B, P)                          # packed rows needed (P batch rows each)
    R8 = _round_up(max(R, 1), 8)               # legal sublane count
    # Cap the tile so the grid has >=2 steps when possible (v7x megacore sharding),
    # but never exceed max_rows_tile (keeps per-step traffic ~1.5 MiB, VMEM small).
    rows_tile = max(8, min(max_rows_tile, _round_up(pl.cdiv(R8, 2), 8)))
    R_pad = _round_up(R8, rows_tile)
    grid = R_pad // rows_tile
    B_pad = R_pad * P

    # ---- pack batch into lanes via a free, contiguous reshape ----------------
    if B_pad != B:
        x = jnp.pad(x, ((0, B_pad - B), (0, 0)))   # zero rows, sliced off below
    x_packed = x.reshape(R_pad, P * n_states)

    # ---- block-diagonal (replicated) weights, tiled biases --------------------
    eye_p = jnp.eye(P, dtype=x.dtype)
    w1_eff = jnp.kron(eye_p, w1.T.astype(x.dtype))            # (P*n_states, P*hidden)
    w2_eff = jnp.kron(eye_p, w2.T.astype(x.dtype))            # (P*hidden, P*n_actions)
    b1_eff = jnp.tile(b1.astype(x.dtype), P).reshape(1, P * hidden)
    b2_eff = jnp.tile(b2.astype(x.dtype), P).reshape(1, P * n_actions)

    o_packed = pl.pallas_call(
        _net_kernel,
        out_shape=jax.ShapeDtypeStruct((R_pad, P * n_actions), x.dtype),
        grid=(grid,),
        in_specs=[
            # x tiles stream through, auto double-buffered
            pl.BlockSpec((rows_tile, P * n_states), lambda i: (i, 0)),
            # weights/biases: constant block index -> DMA'd once, VMEM-resident
            pl.BlockSpec((P * n_states, P * hidden), lambda i: (0, 0)),
            pl.BlockSpec((1, P * hidden), lambda i: (0, 0)),
            pl.BlockSpec((P * hidden, P * n_actions), lambda i: (0, 0)),
            pl.BlockSpec((1, P * n_actions), lambda i: (0, 0)),
        ],
        out_specs=pl.BlockSpec((rows_tile, P * n_actions), lambda i: (i, 0)),
        compiler_params=pltpu.CompilerParams(
            dimension_semantics=("parallel",)),   # shard tiles over both TCs on v7x
    )(x_packed, w1_eff, b1_eff, w2_eff, b2_eff)

    # Free contiguous reshape back to per-row layout; drop padding rows.
    return o_packed.reshape(B_pad, n_actions)[:B]


def init_params(key, n_states, n_actions, hidden=4):
    """Synthetic init mirroring Net.__init__: weight ~ N(0, 0.1), PyTorch (out, in) layout."""
    k1, k2 = jax.random.split(key, 2)
    w1 = 0.1 * jax.random.normal(k1, (hidden, n_states), dtype=jnp.float32)
    w2 = 0.1 * jax.random.normal(k2, (n_actions, hidden), dtype=jnp.float32)
    b1 = jnp.full((hidden,), 0.01, dtype=jnp.float32)
    b2 = jnp.full((n_actions,), 0.02, dtype=jnp.float32)
    return w1, b1, w2, b2


if __name__ == "__main__":
    n_states, n_actions, hidden = 4, 2, 4
    key = jax.random.PRNGKey(0)
    kx, kp, kb, kr = jax.random.split(key, 4)

    w1, b1, w2, b2 = init_params(kp, n_states, n_actions, hidden)

    def ref_forward(xv):
        return jnp.maximum(xv @ w1.T + b1, 0.0) @ w2.T + b2

    fwd = jax.jit(net_forward)

    # 1) Tiny batch (DQN choose_action path): single grid step, one padded tile.
    x_small = jax.random.normal(kx, (2, n_states), dtype=jnp.float32)
    out_small = jax.block_until_ready(fwd(x_small, w1, b1, w2, b2))
    assert out_small.shape == (2, n_actions)
    assert jnp.allclose(out_small, ref_forward(x_small), atol=1e-4, rtol=1e-4)

    # 2) Replay-batch path: B=2048 -> 32 packed rows -> 2 grid steps (megacore-friendly).
    x_big = jax.random.normal(kb, (2048, n_states), dtype=jnp.float32)
    out_big = jax.block_until_ready(fwd(x_big, w1, b1, w2, b2))
    assert out_big.shape == (2048, n_actions)
    assert jnp.allclose(out_big, ref_forward(x_big), atol=1e-4, rtol=1e-4)

    # 3) Ragged batch: exercises the zero-pad / slice-off path of the cdiv grid.
    x_rag = jax.random.normal(kr, (1000, n_states), dtype=jnp.float32)
    out_rag = jax.block_until_ready(fwd(x_rag, w1, b1, w2, b2))
    assert out_rag.shape == (1000, n_actions)
    assert jnp.allclose(out_rag, ref_forward(x_rag), atol=1e-4, rtol=1e-4)

    print("KERNEL_OK")
</pallas_src>

<mosaic_0001>
module attributes {stable_mosaic.version = 11 : i64} {
  func.func @_net_kernel(%arg0: i32, %arg1: memref<8x256xf32, #tpu.memory_space<vmem>>, %arg2: memref<256x256xf32, #tpu.memory_space<vmem>>, %arg3: memref<1x256xf32, #tpu.memory_space<vmem>>, %arg4: memref<256x128xf32, #tpu.memory_space<vmem>>, %arg5: memref<1x128xf32, #tpu.memory_space<vmem>>, %arg6: memref<8x128xf32, #tpu.memory_space<vmem>>) attributes {dimension_semantics = [#tpu.dimension_semantics<parallel>], iteration_bounds = array<i64: 1>, scalar_prefetch = 0 : i64, scratch_operands = 0 : i64, tpu.core_type = #tpu.core_type<tc>, window_params = [{transform_indices = @transform_0, window_bounds = array<i64: 8, 256>}, {pipeline_mode = #tpu.pipeline_mode<synchronous>, transform_indices = @transform_1, window_bounds = array<i64: 256, 256>}, {pipeline_mode = #tpu.pipeline_mode<synchronous>, transform_indices = @transform_2, window_bounds = array<i64: 1, 256>}, {pipeline_mode = #tpu.pipeline_mode<synchronous>, transform_indices = @transform_3, window_bounds = array<i64: 256, 128>}, {pipeline_mode = #tpu.pipeline_mode<synchronous>, transform_indices = @transform_4, window_bounds = array<i64: 1, 128>}, {transform_indices = @transform_5, window_bounds = array<i64: 8, 128>}]} {
    %c0 = arith.constant 0 : index
    %c0_0 = arith.constant 0 : index
    %0 = vector.load %arg1[%c0, %c0_0] : memref<8x256xf32, #tpu.memory_space<vmem>>, vector<8x256xf32>
    %c0_1 = arith.constant 0 : index
    %c0_2 = arith.constant 0 : index
    %1 = vector.load %arg2[%c0_1, %c0_2] : memref<256x256xf32, #tpu.memory_space<vmem>>, vector<256x256xf32>
    %cst = arith.constant dense<0.000000e+00> : vector<8x256xf32>
    %2 = tpu.matmul %0, %1, %cst {dimension_numbers = #tpu.dot_dimension_numbers<[1], [0], [0], [1], [0, 0, 1, 1], [], []>} : vector<8x256xf32>, vector<256x256xf32>, vector<8x256xf32> -> vector<8x256xf32>
    %c0_3 = arith.constant 0 : index
    %c0_4 = arith.constant 0 : index
    %3 = vector.load %arg3[%c0_3, %c0_4] : memref<1x256xf32, #tpu.memory_space<vmem>>, vector<1x256xf32>
    %4 = vector.broadcast %3 : vector<1x256xf32> to vector<8x256xf32>
    %5 = arith.addf %2, %4 : vector<8x256xf32>
    %cst_5 = arith.constant 0.000000e+00 : f32
    %6 = vector.broadcast %cst_5 : f32 to vector<8x256xf32>
    %7 = arith.maximumf %5, %6 : vector<8x256xf32>
    %c0_6 = arith.constant 0 : index
    %c0_7 = arith.constant 0 : index
    %8 = vector.load %arg4[%c0_6, %c0_7] : memref<256x128xf32, #tpu.memory_space<vmem>>, vector<256x128xf32>
    %cst_8 = arith.constant dense<0.000000e+00> : vector<8x128xf32>
    %9 = tpu.matmul %7, %8, %cst_8 {dimension_numbers = #tpu.dot_dimension_numbers<[1], [0], [0], [1], [0, 0, 1, 1], [], []>} : vector<8x256xf32>, vector<256x128xf32>, vector<8x128xf32> -> vector<8x128xf32>
    %c0_9 = arith.constant 0 : index
    %c0_10 = arith.constant 0 : index
    %10 = vector.load %arg5[%c0_9, %c0_10] : memref<1x128xf32, #tpu.memory_space<vmem>>, vector<1x128xf32>
    %11 = vector.broadcast %10 : vector<1x128xf32> to vector<8x128xf32>
    %12 = arith.addf %9, %11 : vector<8x128xf32>
    %c0_11 = arith.constant 0 : index
    %c0_12 = arith.constant 0 : index
    %13 = vector.load %arg6[%c0_11, %c0_12] : memref<8x128xf32, #tpu.memory_space<vmem>>, vector<8x128xf32>
    tpu.vector_store %arg6[%c0_11, %c0_12], %12 {strides = array<i32>} : memref<8x128xf32, #tpu.memory_space<vmem>>, vector<8x128xf32>,
    return
  }
  func.func @transform_0(%arg0: i32) -> (i32, i32) {
    %c0_i32 = arith.constant 0 : i32
    %c0_i32_0 = arith.constant 0 : i32
    return %arg0, %c0_i32 : i32, i32
  }
  func.func @transform_1(%arg0: i32) -> (i32, i32) {
    %c0_i32 = arith.constant 0 : i32
    %c0_i32_0 = arith.constant 0 : i32
    %c0_i32_1 = arith.constant 0 : i32
    return %c0_i32, %c0_i32_0 : i32, i32
  }
  func.func @transform_2(%arg0: i32) -> (i32, i32) {
    %c0_i32 = arith.constant 0 : i32
    %c0_i32_0 = arith.constant 0 : i32
    %c0_i32_1 = arith.constant 0 : i32
    return %c0_i32, %c0_i32_0 : i32, i32
  }
  func.func @transform_3(%arg0: i32) -> (i32, i32) {
    %c0_i32 = arith.constant 0 : i32
    %c0_i32_0 = arith.constant 0 : i32
    %c0_i32_1 = arith.constant 0 : i32
    return %c0_i32, %c0_i32_0 : i32, i32
  }
  func.func @transform_4(%arg0: i32) -> (i32, i32) {
    %c0_i32 = arith.constant 0 : i32
    %c0_i32_0 = arith.constant 0 : i32
    %c0_i32_1 = arith.constant 0 : i32
    return %c0_i32, %c0_i32_0 : i32, i32
  }
  func.func @transform_5(%arg0: i32) -> (i32, i32) {
    %c0_i32 = arith.constant 0 : i32
    %c0_i32_0 = arith.constant 0 : i32
    return %arg0, %c0_i32 : i32, i32
  }
}

</mosaic_0001>

<bundles_post_ra>
// kernel: tile.13
= control target key start
LH: loop header
LB: loop body
LE: loop exit
PB: predicated region body
PF: predicated region fallthrough
CT: control target
= control target key end

     0   :  { %s64_s0 = inlined_call_operand.vmem [shape: f32[4], index: 0, kind: input, shape index: {}]   ;;  %s65_s1 = inlined_call_operand.vmem [shape: f32[64,4], index: 1, kind: output, shape index: {}]  }
   0x1   :  { %v4_v0 = vld [vmem:[%s64_s0] ss:$0 sm:$0xff] }
   0x2   :  { %5 = vst [vmem:[%s65_s1] sm:$0xff] %v4_v0 }
   0x3   :  { %20 = vst [vmem:[%s65_s1 + $0x8] sm:$0xff] %v4_v0 }
   0x4   :  { %21 = vst [vmem:[%s65_s1 + $0x10] sm:$0xff] %v4_v0 }
   0x5   :  { %22 = vst [vmem:[%s65_s1 + $0x18] sm:$0xff] %v4_v0 }
   0x6   :  { %23 = vst [vmem:[%s65_s1 + $0x20] sm:$0xff] %v4_v0 }
   0x7   :  { %24 = vst [vmem:[%s65_s1 + $0x28] sm:$0xff] %v4_v0 }
   0x8   :  { %25 = vst [vmem:[%s65_s1 + $0x30] sm:$0xff] %v4_v0 }
   0x9   :  { %26 = vst [vmem:[%s65_s1 + $0x38] sm:$0xff] %v4_v0 }

// kernel: tile.14
= control target key start
LH: loop header
LB: loop body
LE: loop exit
PB: predicated region body
PF: predicated region fallthrough
CT: control target
= control target key end

     0   :  { %vm5_vm0 = vcmask 1041409   ;;  %s426_s14 = smov 124   ;;  %s427_s15 = smov 116   ;;  %vm7_vm1 = vcmask 31744   ;;  %vm17_vm2 = vcmask 1048544   ;;  %vm27_vm3 = vcmask 1015744   ;;  %s697_s0 = inlined_call_operand.vmem [shape: f32[64,4], index: 0, kind: input, shape index: {}]   ;;  %s698_s1 = inlined_call_operand.vmem [shape: f32[1,256], index: 1, kind: output, shape index: {}]  }
   0x1   :  { %v332_v0 = vld [vmem:[%s697_s0 + $0x1f] sm:$0x1]   ;;  %v336_v3 = vld [vmem:[%s697_s0 + $0x1d] sm:$0x1]   ;;  %v334_v6 = vld [vmem:[%s697_s0 + $0x1e] sm:$0x1]  }
   0x2   :  { %v333_v1 = vld [vmem:[%s697_s0 + $0x3e] sm:$0x2]   ;;  %v337_v4 = vld [vmem:[%s697_s0 + $0x3c] sm:$0x2]   ;;  %v335_v7 = vld [vmem:[%s697_s0 + $0x3d] sm:$0x2]  }
   0x3   :  { %v14_v2 = vsel %vm5_vm0, %v333_v1, %v332_v0  ;;  %v34_v5 = vsel %vm5_vm0, %v337_v4, %v336_v3  ;;  %v338_v8 = vld [vmem:[%s697_s0 + $0x1c] sm:$0x1]   ;;  %v24_v10 = vsel %vm5_vm0, %v335_v7, %v334_v6  ;;  %v340_v11 = vld [vmem:[%s697_s0 + $0x1b] sm:$0x1]   ;;  %s428_s28 = smov 108   ;;  %s429_s29 = smov 120  }
   0x4   :  { %15 = vrot.lane.b32.xlu0 %v14_v2, %s426_s14  ;;  %35 = vrot.lane.b32.xlu1 %v34_v5, %s427_s15  ;;  %v339_v9 = vld [vmem:[%s697_s0 + $0x3b] sm:$0x2]   ;;  %v341_v12 = vld [vmem:[%s697_s0 + $0x3a] sm:$0x2]   ;;  %s430_s30 = smov 112   ;;  %s431_s14 = smov 104  }
   0x5   :  { %v44_v13 = vsel %vm5_vm0, %v339_v9, %v338_v8  ;;  %v54_v14 = vsel %vm5_vm0, %v341_v12, %v340_v11  ;;  %v342_v15 = vld [vmem:[%s697_s0 + $0x1a] sm:$0x1]   ;;  %v344_v17 = vld [vmem:[%s697_s0 + $0x19] sm:$0x1]   ;;  %v346_v19 = vld [vmem:[%s697_s0 + $0x18] sm:$0x1]  }
   0x6   :  { %55 = vrot.lane.b32.xlu2 %v54_v14, %s428_s28  ;;  %v343_v16 = vld [vmem:[%s697_s0 + $0x39] sm:$0x2]   ;;  %v345_v18 = vld [vmem:[%s697_s0 + $0x38] sm:$0x2]   ;;  %v347_v20 = vld [vmem:[%s697_s0 + $0x37] sm:$0x2]  }
   0x7   :  { %v64_v21 = vsel %vm5_vm0, %v343_v16, %v342_v15  ;;  %v74_v22 = vsel %vm5_vm0, %v345_v18, %v344_v17  ;;  %v84_v23 = vsel %vm5_vm0, %v347_v20, %v346_v19  ;;  %s432_s15 = smov 100   ;;  %s433_s16 = smov 96   ;;  %v348_v24 = vld [vmem:[%s697_s0 + $0x17] sm:$0x1]   ;;  %v350_v26 = vld [vmem:[%s697_s0 + $0x16] sm:$0x1]  }
   0x8   :  { %v349_v25 = vld [vmem:[%s697_s0 + $0x36] sm:$0x2]   ;;  %v351_v27 = vld [vmem:[%s697_s0 + $0x35] sm:$0x2]   ;;  %v352_v28 = vld [vmem:[%s697_s0 + $0x15] sm:$0x1]  }
   0x9   :  { %v353_v29 = vld [vmem:[%s697_s0 + $0x34] sm:$0x2]   ;;  %v94_v30 = vsel %vm5_vm0, %v349_v25, %v348_v24  ;;  %v104_v31 = vsel %vm5_vm0, %v351_v27, %v350_v26  ;;  %s436_s2 = smov 84   ;;  %v354_v33 = vld [vmem:[%s697_s0 + $0x14] sm:$0x1]   ;;  %s439_s17 = smov 72  }
   0xa   :  { %v114_v32 = vsel %vm5_vm0, %v353_v29, %v352_v28  ;;  %v355_v34 = vld [vmem:[%s697_s0 + $0x33] sm:$0x2]   ;;  %v356_v35 = vld [vmem:[%s697_s0 + $0x13] sm:$0x1]   ;;  %v358_v37 = vld [vmem:[%s697_s0 + $0x12] sm:$0x1]  }
   0xb   :  { %v357_v36 = vld [vmem:[%s697_s0 + $0x32] sm:$0x2]   ;;  %v359_v38 = vld [vmem:[%s697_s0 + $0x31] sm:$0x2]   ;;  %v124_v39 = vsel %vm5_vm0, %v355_v34, %v354_v33  ;;  %v360_v42 = vld [vmem:[%s697_s0 + $0x11] sm:$0x1]  }
   0xc   :  { %25 = vrot.lane.b32.xlu0 %v24_v10, %s429_s29  ;;  %45 = vrot.lane.b32.xlu1 %v44_v13, %s430_s30  ;;  %s434_s29 = smov 92   ;;  %s435_s30 = smov 88   ;;  %v134_v40 = vsel %vm5_vm0, %v357_v36, %v356_v35  ;;  %v144_v41 = vsel %vm5_vm0, %v359_v38, %v358_v37  ;;  %v361_v43 = vld [vmem:[%s697_s0 + $0x30] sm:$0x2]   ;;  %v362_v44 = vld [vmem:[%s697_s0 + $0x10] sm:$0x1]  }
   0xd   :  { %v363_v45 = vld [vmem:[%s697_s0 + $0x2f] sm:$0x2]   ;;  %v364_v46 = vld [vmem:[%s697_s0 + $0xf] sm:$0x1]   ;;  %v154_v48 = vsel %vm5_vm0, %v361_v43, %v360_v42  ;;  %s442_s3 = smov 60   ;;  %s445_s18 = smov 48  }
   0xe   :  { %65 = vrot.lane.b32.xlu2 %v64_v21, %s431_s14  ;;  %v365_v47 = vld [vmem:[%s697_s0 + $0x2e] sm:$0x2]   ;;  %v164_v49 = vsel %vm5_vm0, %v363_v45, %v362_v44  ;;  %v366_v51 = vld [vmem:[%s697_s0 + $0xe] sm:$0x1]   ;;  %v368_v53 = vld [vmem:[%s697_s0 + $0xd] sm:$0x1]  }
   0xf   :  { %v174_v50 = vsel %vm5_vm0, %v365_v47, %v364_v46  ;;  %v367_v52 = vld [vmem:[%s697_s0 + $0x2d] sm:$0x2]   ;;  %v369_v54 = vld [vmem:[%s697_s0 + $0x2c] sm:$0x2]   ;;  %v370_v55 = vld [vmem:[%s697_s0 + $0xc] sm:$0x1]  }
  0x10   :  { %v371_v56 = vld [vmem:[%s697_s0 + $0x2b] sm:$0x2]   ;;  %v184_v57 = vsel %vm5_vm0, %v367_v52, %v366_v51  ;;  %v194_v58 = vsel %vm5_vm0, %v369_v54, %v368_v53  ;;  %v372_v60 = vld [vmem:[%s697_s0 + $0xb] sm:$0x1]   ;;  %v374_v62 = vld [vmem:[%s697_s0 + $0xa] sm:$0x1]  }
  0x11   :  { %v204_v59 = vsel %vm5_vm0, %v371_v56, %v370_v55  ;;  %v373_v61 = vld [vmem:[%s697_s0 + $0x2a] sm:$0x2]   ;;  %v375_v63 = vld [vmem:[%s697_s0 + $0x29] sm:$0x2]   ;;  %v376_v0 = vld [vmem:[%s697_s0 + $0x9] sm:$0x1]  }
  0x12   :  { %v377_v1 = vld [vmem:[%s697_s0 + $0x28] sm:$0x2]   ;;  %v214_v2 = vsel %vm5_vm0, %v373_v61, %v372_v60  ;;  %v224_v3 = vsel %vm5_vm0, %v375_v63, %v374_v62  ;;  %s448_s4 = smov 36   ;;  %v378_v5 = vld [vmem:[%s697_s0 + $0x8] sm:$0x1]   ;;  %s451_s19 = smov 24  }
  0x13   :  { %v234_v4 = vsel %vm5_vm0, %v377_v1, %v376_v0  ;;  %v379_v6 = vld [vmem:[%s697_s0 + $0x27] sm:$0x2]   ;;  %v380_v7 = vld [vmem:[%s697_s0 + $0x7] sm:$0x1]   ;;  %v382_v9 = vld [vmem:[%s697_s0 + $0x6] sm:$0x1]  }
  0x14   :  { %75 = vrot.lane.b32.xlu0 %v74_v22, %s432_s15  ;;  %85 = vrot.lane.b32.xlu1 %v84_v23, %s433_s16  ;;  %s437_s15 = smov 80   ;;  %s438_s16 = smov 76   ;;  %v381_v8 = vld [vmem:[%s697_s0 + $0x26] sm:$0x2]   ;;  %v383_v10 = vld [vmem:[%s697_s0 + $0x25] sm:$0x2]   ;;  %v244_v11 = vsel %vm5_vm0, %v379_v6, %v378_v5 }
  0x15   :  { %v254_v12 = vsel %vm5_vm0, %v381_v8, %v380_v7  ;;  %v264_v13 = vsel %vm5_vm0, %v383_v10, %v382_v9  ;;  %v384_v14 = vld [vmem:[%s697_s0 + $0x5] sm:$0x1]   ;;  %v386_v16 = vld [vmem:[%s697_s0 + $0x4] sm:$0x1]   ;;  %v388_v18 = vld [vmem:[%s697_s0 + $0x3] sm:$0x1]  }
  0x16   :  { %95 = vrot.lane.b32.xlu2 %v94_v30, %s434_s29  ;;  %v385_v15 = vld [vmem:[%s697_s0 + $0x24] sm:$0x2]   ;;  %v387_v17 = vld [vmem:[%s697_s0 + $0x23] sm:$0x2]   ;;  %v389_v19 = vld [vmem:[%s697_s0 + $0x22] sm:$0x2]  }
  0x17   :  { %v274_v20 = vsel %vm5_vm0, %v385_v15, %v384_v14  ;;  %v284_v21 = vsel %vm5_vm0, %v387_v17, %v386_v16  ;;  %v294_v22 = vsel %vm5_vm0, %v389_v19, %v388_v18  ;;  %s454_s5 = smov 12   ;;  %v390_v23 = vld [vmem:[%s697_s0 + $0x2] sm:$0x1]   ;;  %v392_v25 = vld [vmem:[%s697_s0 + $0x1] sm:$0x1]   ;;  %s455_s14 = smov 8  }
  0x18   :  { %v391_v24 = vld [vmem:[%s697_s0 + $0x21] sm:$0x2]   ;;  %v393_v26 = vld [vmem:[%s697_s0 + $0x20] sm:$0x2]   ;;  %v2_v29 = vld [vmem:[%s697_s0] sm:$0x1]  }
  0x19   :  { %v304_v27 = vsel %vm5_vm0, %v391_v24, %v390_v23  ;;  %v314_v28 = vsel %vm5_vm0, %v393_v26, %v392_v25  ;;  %v331_v30 = vld [vmem:[%s697_s0 + $0x1f] sm:$0x2]   ;;  %vm37_vm4 = vcmask 982944   ;;  %vm47_vm5 = vcmask 950144  }
  0x1a   :  { %vm57_vm6 = vcmask 917344   ;;  %vm67_vm7 = vcmask 884544   ;;  %vm77_vm8 = vcmask 851744   ;;  %vm87_vm9 = vcmask 818944  }
  0x1b   :  { %vm97_vm10 = vcmask 786144   ;;  %vm107_vm11 = vcmask 753344   ;;  %vm117_vm12 = vcmask 720544   ;;  %vm127_vm13 = vcmask 687744  }
  0x1c   :  { %105 = vrot.lane.b32.xlu0 %v104_v31, %s435_s30  ;;  %115 = vrot.lane.b32.xlu1 %v114_v32, %s436_s2  ;;  %s440_s30 = smov 68   ;;  %s441_s2 = smov 64   ;;  %v6_v31 = vsel %vm5_vm0, %v331_v30, %v2_v29  ;;  %vm137_vm14 = vcmask 654944   ;;  %vm147_vm15 = vcmask 622144   ;;  %vm157_vm0 = vcmask 589344  }
  0x1d   :  { %8 = vst.msk [vmem:[#allocation0] ss:$8 sm:$0x3] %vm7_vm1, %v6_v31   ;;  %vm167_vm1 = vcmask 556544  }
  0x1e   :  { %125 = vrot.lane.b32.xlu2 %v124_v39, %s437_s15  ;;  %s456_s15 = smov 4  }
  0x24   :  { %135 = vrot.lane.b32.xlu0 %v134_v40, %s438_s16  ;;  %145 = vrot.lane.b32.xlu1 %v144_v41, %s439_s17  ;;  %s443_s16 = smov 56   ;;  %s444_s17 = smov 52  }
  0x26   :  { %155 = vrot.lane.b32.xlu2 %v154_v48, %s440_s30 }
  0x2c   :  { %165 = vrot.lane.b32.xlu0 %v164_v49, %s441_s2  ;;  %175 = vrot.lane.b32.xlu1 %v174_v50, %s442_s3  ;;  %s446_s2 = smov 44   ;;  %s447_s3 = smov 40  }
  0x2e   :  { %185 = vrot.lane.b32.xlu2 %v184_v57, %s443_s16 }
  0x34   :  { %195 = vrot.lane.b32.xlu0 %v194_v58, %s444_s17  ;;  %205 = vrot.lane.b32.xlu1 %v204_v59, %s445_s18  ;;  %s449_s17 = smov 32   ;;  %s450_s18 = smov 28  }
  0x36   :  { %215 = vrot.lane.b32.xlu2 %v214_v2, %s446_s2 }
  0x3c   :  { %225 = vrot.lane.b32.xlu0 %v224_v3, %s447_s3  ;;  %235 = vrot.lane.b32.xlu1 %v234_v4, %s448_s4  ;;  %s452_s3 = smov 20   ;;  %s453_s4 = smov 16  }
  0x3e   :  { %245 = vrot.lane.b32.xlu2 %v244_v11, %s449_s17 }
  0x44   :  { %255 = vrot.lane.b32.xlu0 %v254_v12, %s450_s18  ;;  %265 = vrot.lane.b32.xlu1 %v264_v13, %s451_s19 }
  0x46   :  { %275 = vrot.lane.b32.xlu2 %v274_v20, %s452_s3 }
  0x4c   :  { %285 = vrot.lane.b32.xlu0 %v284_v21, %s453_s4  ;;  %295 = vrot.lane.b32.xlu1 %v294_v22, %s454_s5 }
  0x4e   :  { %305 = vrot.lane.b32.xlu2 %v304_v27, %s455_s14 }
  0x54   :  { %315 = vrot.lane.b32.xlu0 %v314_v28, %s456_s15 }
  0x60   :  { %v56_v32 = vpop.permute.xlu2 %55  }
  0x68   :  { %v66_v33 = vpop.permute.xlu2 %65  }
  0x70   :  { %v96_v34 = vpop.permute.xlu2 %95  }
  0x76   :  { %v16_v35 = vpop.permute.xlu0 %15   ;;  %v36_v36 = vpop.permute.xlu1 %35  }
  0x77   :  { %18 = vst.msk [vmem:[#allocation0] ss:$8 sm:$0x3] %vm17_vm2, %v16_v35   ;;  %vm177_vm2 = vcmask 523744  }
  0x78   :  { %v126_v37 = vpop.permute.xlu2 %125  }
  0x7e   :  { %v26_v38 = vpop.permute.xlu0 %25   ;;  %v46_v39 = vpop.permute.xlu1 %45  }
  0x7f   :  { %28 = vst.msk [vmem:[#allocation0] ss:$8 sm:$0x3] %vm27_vm3, %v26_v38   ;;  %vm187_vm3 = vcmask 490944  }
  0x80   :  { %38 = vst.msk [vmem:[#allocation0] ss:$8 sm:$0x3] %vm37_vm4, %v36_v36   ;;  %v156_v40 = vpop.permute.xlu2 %155   ;;  %vm197_vm4 = vcmask 458144  }
  0x81   :  { %48 = vst.msk [vmem:[#allocation0] ss:$8 sm:$0x3] %vm47_vm5, %v46_v39   ;;  %vm207_vm5 = vcmask 425344  }
  0x82   :  { %58 = vst.msk [vmem:[#allocation0] ss:$8 sm:$0x3] %vm57_vm6, %v56_v32   ;;  %vm217_vm6 = vcmask 392544  }
  0x83   :  { %68 = vst.msk [vmem:[#allocation0] ss:$8 sm:$0x3] %vm67_vm7, %v66_v33   ;;  %vm227_vm7 = vcmask 359744  }
  0x86   :  { %v76_v41 = vpop.permute.xlu0 %75   ;;  %v86_v42 = vpop.permute.xlu1 %85  }
  0x87   :  { %78 = vst.msk [vmem:[#allocation0] ss:$8 sm:$0x3] %vm77_vm8, %v76_v41   ;;  %vm237_vm8 = vcmask 326944  }
  0x88   :  { %88 = vst.msk [vmem:[#allocation0] ss:$8 sm:$0x3] %vm87_vm9, %v86_v42   ;;  %v186_v43 = vpop.permute.xlu2 %185   ;;  %vm247_vm9 = vcmask 294144  }
  0x89   :  { %98 = vst.msk [vmem:[#allocation0] ss:$8 sm:$0x3] %vm97_vm10, %v96_v34   ;;  %vm257_vm10 = vcmask 261344  }
  0x8e   :  { %v106_v44 = vpop.permute.xlu0 %105   ;;  %v116_v45 = vpop.permute.xlu1 %115  }
  0x8f   :  { %108 = vst.msk [vmem:[#allocation0] ss:$8 sm:$0x3] %vm107_vm11, %v106_v44   ;;  %vm267_vm11 = vcmask 228544  }
  0x90   :  { %118 = vst.msk [vmem:[#allocation0] ss:$8 sm:$0x3] %vm117_vm12, %v116_v45   ;;  %v216_v46 = vpop.permute.xlu2 %215   ;;  %vm277_vm12 = vcmask 195744  }
  0x91   :  { %128 = vst.msk [vmem:[#allocation0] ss:$8 sm:$0x3] %vm127_vm13, %v126_v37   ;;  %vm287_vm13 = vcmask 162944  }
  0x96   :  { %v136_v47 = vpop.permute.xlu0 %135   ;;  %v146_v48 = vpop.permute.xlu1 %145  }
  0x97   :  { %138 = vst.msk [vmem:[#allocation0] ss:$8 sm:$0x3] %vm137_vm14, %v136_v47   ;;  %vm297_vm14 = vcmask 130144  }
  0x98   :  { %148 = vst.msk [vmem:[#allocation0] ss:$8 sm:$0x3] %vm147_vm15, %v146_v48   ;;  %v246_v49 = vpop.permute.xlu2 %245   ;;  %vm307_vm15 = vcmask 97344  }
  0x99   :  { %158 = vst.msk [vmem:[#allocation0] ss:$8 sm:$0x3] %vm157_vm0, %v156_v40   ;;  %vm317_vm0 = vcmask 64544  }
  0x9e   :  { %v166_v50 = vpop.permute.xlu0 %165   ;;  %v176_v51 = vpop.permute.xlu1 %175  }
  0x9f   :  { %168 = vst.msk [vmem:[#allocation0] ss:$8 sm:$0x3] %vm167_vm1, %v166_v50  }
  0xa0   :  { %178 = vst.msk [vmem:[#allocation0] ss:$8 sm:$0x3] %vm177_vm2, %v176_v51   ;;  %v276_v52 = vpop.permute.xlu2 %275  }
  0xa1   :  { %188 = vst.msk [vmem:[#allocation0] ss:$8 sm:$0x3] %vm187_vm3, %v186_v43  }
  0xa6   :  { %v196_v53 = vpop.permute.xlu0 %195   ;;  %v206_v54 = vpop.permute.xlu1 %205  }
  0xa7   :  { %198 = vst.msk [vmem:[#allocation0] ss:$8 sm:$0x3] %vm197_vm4, %v196_v53  }
  0xa8   :  { %208 = vst.msk [vmem:[#allocation0] ss:$8 sm:$0x3] %vm207_vm5, %v206_v54   ;;  %v306_v55 = vpop.permute.xlu2 %305  }
  0xa9   :  { %218 = vst.msk [vmem:[#allocation0] ss:$8 sm:$0x3] %vm217_vm6, %v216_v46  }
  0xae   :  { %v226_v56 = vpop.permute.xlu0 %225   ;;  %v236_v57 = vpop.permute.xlu1 %235  }
  0xaf   :  { %228 = vst.msk [vmem:[#allocation0] ss:$8 sm:$0x3] %vm227_vm7, %v226_v56  }
  0xb0   :  { %238 = vst.msk [vmem:[#allocation0] ss:$8 sm:$0x3] %vm237_vm8, %v236_v57  }
  0xb1   :  { %248 = vst.msk [vmem:[#allocation0] ss:$8 sm:$0x3] %vm247_vm9, %v246_v49  }
  0xb6   :  { %v256_v58 = vpop.permute.xlu0 %255   ;;  %v266_v59 = vpop.permute.xlu1 %265  }
  0xb7   :  { %258 = vst.msk [vmem:[#allocation0] ss:$8 sm:$0x3] %vm257_vm10, %v256_v58  }
  0xb8   :  { %268 = vst.msk [vmem:[#allocation0] ss:$8 sm:$0x3] %vm267_vm11, %v266_v59  }
  0xb9   :  { %278 = vst.msk [vmem:[#allocation0] ss:$8 sm:$0x3] %vm277_vm12, %v276_v52  }
  0xbe   :  { %v286_v60 = vpop.permute.xlu0 %285   ;;  %v296_v61 = vpop.permute.xlu1 %295  }
  0xbf   :  { %288 = vst.msk [vmem:[#allocation0] ss:$8 sm:$0x3] %vm287_vm13, %v286_v60  }
  0xc0   :  { %298 = vst.msk [vmem:[#allocation0] ss:$8 sm:$0x3] %vm297_vm14, %v296_v61  }
  0xc1   :  { %308 = vst.msk [vmem:[#allocation0] ss:$8 sm:$0x3] %vm307_vm15, %v306_v55  }
  0xc6   :  { %v316_v62 = vpop.permute.xlu0 %315  }
  0xc7   :  { %318 = vst.msk [vmem:[#allocation0] ss:$8 sm:$0x3] %vm317_vm0, %v316_v62  }
  0xce   :  { %v321_v63 = vld [vmem:[#allocation0] sm:$0x1]  ;;  %v326_v0 = vld [vmem:[#allocation0 + $0x8] sm:$0x1] }
  0xcf   :  { %324 = vst [vmem:[%s698_s1] sm:$0x1] %v321_v63 }
  0xd0   :  { %394 = vst [vmem:[%s698_s1 + $0x1] sm:$0x1] %v326_v0 }

// kernel: tile.18
= control target key start
LH: loop header
LB: loop body
LE: loop exit
PB: predicated region body
PF: predicated region fallthrough
CT: control target
= control target key end

     0   :  { %s64_s0 = inlined_call_operand.vmem [shape: f32[2], index: 0, kind: input, shape index: {}]   ;;  %s65_s1 = inlined_call_operand.vmem [shape: f32[64,2], index: 1, kind: output, shape index: {}]  }
   0x1   :  { %v4_v0 = vld [vmem:[%s64_s0] ss:$0 sm:$0xff] }
   0x2   :  { %5 = vst [vmem:[%s65_s1] sm:$0xff] %v4_v0 }
   0x3   :  { %20 = vst [vmem:[%s65_s1 + $0x8] sm:$0xff] %v4_v0 }
   0x4   :  { %21 = vst [vmem:[%s65_s1 + $0x10] sm:$0xff] %v4_v0 }
   0x5   :  { %22 = vst [vmem:[%s65_s1 + $0x18] sm:$0xff] %v4_v0 }
   0x6   :  { %23 = vst [vmem:[%s65_s1 + $0x20] sm:$0xff] %v4_v0 }
   0x7   :  { %24 = vst [vmem:[%s65_s1 + $0x28] sm:$0xff] %v4_v0 }
   0x8   :  { %25 = vst [vmem:[%s65_s1 + $0x30] sm:$0xff] %v4_v0 }
   0x9   :  { %26 = vst [vmem:[%s65_s1 + $0x38] sm:$0xff] %v4_v0 }

// kernel: tile.19
= control target key start
LH: loop header
LB: loop body
LE: loop exit
PB: predicated region body
PF: predicated region fallthrough
CT: control target
= control target key end

     0   :  { %s515_s10 = smov 126   ;;  %s516_s11 = smov 122   ;;  %vm3_vm0 = vcmask 15360   ;;  %vm9_vm1 = vcmask 1048560   ;;  %vm15_vm2 = vcmask 1032160   ;;  %vm21_vm3 = vcmask 1015760   ;;  %s783_s0 = inlined_call_operand.vmem [shape: f32[64,2], index: 0, kind: input, shape index: {}]   ;;  %s784_s1 = inlined_call_operand.vmem [shape: f32[1,128], index: 1, kind: output, shape index: {}]  }
   0x1   :  { %v389_v0 = vld [vmem:[%s783_s0 + $0x3f] sm:$0x1]   ;;  %v391_v1 = vld [vmem:[%s783_s0 + $0x3d] sm:$0x1]   ;;  %v393_v2 = vld [vmem:[%s783_s0 + $0x3b] sm:$0x1]  }
   0x2   :  { %7 = vrot.lane.b32.xlu0 %v389_v0, %s515_s10  ;;  %19 = vrot.lane.b32.xlu1 %v391_v1, %s516_s11  ;;  %s517_s14 = smov 118   ;;  %v390_v3 = vld [vmem:[%s783_s0 + $0x3e] sm:$0x1]   ;;  %v392_v4 = vld [vmem:[%s783_s0 + $0x3c] sm:$0x1]   ;;  %s518_s19 = smov 124  }
   0x3   :  { %31 = vrot.lane.b32.xlu2 %v393_v2, %s517_s14  ;;  %s519_s20 = smov 120   ;;  %v394_v5 = vld [vmem:[%s783_s0 + $0x3a] sm:$0x1]   ;;  %s520_s23 = smov 116   ;;  %v395_v6 = vld [vmem:[%s783_s0 + $0x39] sm:$0x1]  }
   0x4   :  { %v396_v7 = vld [vmem:[%s783_s0 + $0x38] sm:$0x1]   ;;  %s521_s28 = smov 114   ;;  %s522_s29 = smov 112   ;;  %v397_v8 = vld [vmem:[%s783_s0 + $0x37] sm:$0x1]  }
   0x5   :  { %s523_s3 = smov 110   ;;  %v398_v9 = vld [vmem:[%s783_s0 + $0x36] sm:$0x1]   ;;  %v399_v10 = vld [vmem:[%s783_s0 + $0x35] sm:$0x1]   ;;  %s524_s8 = smov 108  }
   0x6   :  { %s525_s9 = smov 106   ;;  %v400_v11 = vld [vmem:[%s783_s0 + $0x34] sm:$0x1]   ;;  %s526_s12 = smov 104   ;;  %v401_v12 = vld [vmem:[%s783_s0 + $0x33] sm:$0x1]  }
   0x7   :  { %v402_v13 = vld [vmem:[%s783_s0 + $0x32] sm:$0x1]   ;;  %s527_s17 = smov 102   ;;  %s528_s18 = smov 100   ;;  %v403_v14 = vld [vmem:[%s783_s0 + $0x31] sm:$0x1]  }
   0x8   :  { %s529_s21 = smov 98   ;;  %v404_v15 = vld [vmem:[%s783_s0 + $0x30] sm:$0x1]   ;;  %v405_v16 = vld [vmem:[%s783_s0 + $0x2f] sm:$0x1]   ;;  %s530_s26 = smov 96  }
   0x9   :  { %s531_s27 = smov 94   ;;  %v406_v17 = vld [vmem:[%s783_s0 + $0x2e] sm:$0x1]   ;;  %s532_s30 = smov 92   ;;  %v407_v18 = vld [vmem:[%s783_s0 + $0x2d] sm:$0x1]  }
   0xa   :  { %13 = vrot.lane.b32.xlu0 %v390_v3, %s518_s19  ;;  %25 = vrot.lane.b32.xlu1 %v392_v4, %s519_s20  ;;  %v408_v19 = vld [vmem:[%s783_s0 + $0x2c] sm:$0x1]   ;;  %s533_s6 = smov 90   ;;  %s534_s7 = smov 88   ;;  %v409_v20 = vld [vmem:[%s783_s0 + $0x2b] sm:$0x1]  }
   0xb   :  { %37 = vrot.lane.b32.xlu2 %v394_v5, %s520_s23  ;;  %s535_s10 = smov 86   ;;  %v410_v21 = vld [vmem:[%s783_s0 + $0x2a] sm:$0x1]   ;;  %v411_v22 = vld [vmem:[%s783_s0 + $0x29] sm:$0x1]   ;;  %s536_s15 = smov 84  }
   0xc   :  { %s537_s16 = smov 82   ;;  %v412_v23 = vld [vmem:[%s783_s0 + $0x28] sm:$0x1]   ;;  %s538_s19 = smov 80   ;;  %v413_v24 = vld [vmem:[%s783_s0 + $0x27] sm:$0x1]  }
   0xd   :  { %v414_v25 = vld [vmem:[%s783_s0 + $0x26] sm:$0x1]   ;;  %s539_s24 = smov 78   ;;  %s540_s25 = smov 76   ;;  %v415_v26 = vld [vmem:[%s783_s0 + $0x25] sm:$0x1]  }
   0xe   :  { %v416_v27 = vld [vmem:[%s783_s0 + $0x24] sm:$0x1]   ;;  %v417_v28 = vld [vmem:[%s783_s0 + $0x23] sm:$0x1]   ;;  %s542_s4 = smov 72   ;;  %s543_s5 = smov 70  }
   0xf   :  { %v418_v29 = vld [vmem:[%s783_s0 + $0x22] sm:$0x1]   ;;  %v419_v30 = vld [vmem:[%s783_s0 + $0x21] sm:$0x1]   ;;  %v420_v31 = vld [vmem:[%s783_s0 + $0x20] sm:$0x1]  }
  0x10   :  { %s545_s13 = smov 66   ;;  %s546_s14 = smov 64   ;;  %v421_v32 = vld [vmem:[%s783_s0 + $0x1f] sm:$0x1]   ;;  %v2_v33 = vld [vmem:[%s783_s0] sm:$0x1]  }
  0x11   :  { %4 = vst.msk [vmem:[#allocation0] sm:$0x1] %vm3_vm0, %v2_v33   ;;  %v422_v34 = vld [vmem:[%s783_s0 + $0x1e] sm:$0x1]   ;;  %v423_v35 = vld [vmem:[%s783_s0 + $0x1d] sm:$0x1]  }
  0x12   :  { %43 = vrot.lane.b32.xlu0 %v395_v6, %s521_s28  ;;  %49 = vrot.lane.b32.xlu1 %v396_v7, %s522_s29  ;;  %s541_s28 = smov 74   ;;  %v424_v36 = vld [vmem:[%s783_s0 + $0x1c] sm:$0x1]   ;;  %v425_v37 = vld [vmem:[%s783_s0 + $0x1b] sm:$0x1]   ;;  %s557_s22 = smov 42  }
  0x13   :  { %55 = vrot.lane.b32.xlu2 %v397_v8, %s523_s3  ;;  %v426_v38 = vld [vmem:[%s783_s0 + $0x1a] sm:$0x1]   ;;  %v427_v40 = vld [vmem:[%s783_s0 + $0x19] sm:$0x1]   ;;  %v428_v41 = vld [vmem:[%s783_s0 + $0x18] sm:$0x1]  }
  0x14   :  { %v429_v42 = vld [vmem:[%s783_s0 + $0x17] sm:$0x1]   ;;  %v430_v44 = vld [vmem:[%s783_s0 + $0x16] sm:$0x1]   ;;  %v431_v45 = vld [vmem:[%s783_s0 + $0x15] sm:$0x1]  }
  0x15   :  { %v432_v46 = vld [vmem:[%s783_s0 + $0x14] sm:$0x1]   ;;  %s558_s23 = smov 40   ;;  %v433_v48 = vld [vmem:[%s783_s0 + $0x13] sm:$0x1]   ;;  %s560_s2 = smov 36  }
  0x16   :  { %v434_v51 = vld [vmem:[%s783_s0 + $0x12] sm:$0x1]   ;;  %v435_v52 = vld [vmem:[%s783_s0 + $0x11] sm:$0x1]   ;;  %s561_s3 = smov 34   ;;  %vm27_vm4 = vcmask 999360  }
  0x17   :  { %v436_v54 = vld [vmem:[%s783_s0 + $0x10] sm:$0x1]   ;;  %vm33_vm5 = vcmask 982960   ;;  %vm39_vm6 = vcmask 966560   ;;  %v437_v57 = vld [vmem:[%s783_s0 + $0xf] sm:$0x1]  }
  0x18   :  { %v438_v58 = vld [vmem:[%s783_s0 + $0xe] sm:$0x1]   ;;  %s563_s11 = smov 30   ;;  %vm45_vm7 = vcmask 950160   ;;  %vm51_vm8 = vcmask 933760   ;;  %vm57_vm9 = vcmask 917360  }
  0x19   :  { %v439_v60 = vld [vmem:[%s783_s0 + $0xd] sm:$0x1]   ;;  %v440_v63 = vld [vmem:[%s783_s0 + $0xc] sm:$0x1]   ;;  %v441_v0 = vld [vmem:[%s783_s0 + $0xb] sm:$0x1]  }
  0x1a   :  { %61 = vrot.lane.b32.xlu0 %v398_v9, %s524_s8  ;;  %67 = vrot.lane.b32.xlu1 %v399_v10, %s525_s9  ;;  %s544_s8 = smov 68   ;;  %s566_s20 = smov 24   ;;  %vm63_vm10 = vcmask 900960   ;;  %vm69_vm11 = vcmask 884560   ;;  %v442_v2 = vld [vmem:[%s783_s0 + $0xa] sm:$0x1]  }
  0x1b   :  { %73 = vrot.lane.b32.xlu2 %v400_v11, %s526_s12  ;;  %s564_s12 = smov 28   ;;  %vm75_vm12 = vcmask 868160   ;;  %v443_v5 = vld [vmem:[%s783_s0 + $0x9] sm:$0x1]   ;;  %v444_v6 = vld [vmem:[%s783_s0 + $0x8] sm:$0x1]  }
  0x1c   :  { %s569_s29 = smov 18   ;;  %vm81_vm13 = vcmask 851760   ;;  %vm87_vm14 = vcmask 835360   ;;  %v445_v8 = vld [vmem:[%s783_s0 + $0x7] sm:$0x1]   ;;  %vm93_vm15 = vcmask 818960  }
  0x1d   :  { %v446_v11 = vld [vmem:[%s783_s0 + $0x6] sm:$0x1]   ;;  %s572_s9 = smov 12   ;;  %vm99_vm0 = vcmask 802560  }
  0x22   :  { %79 = vrot.lane.b32.xlu0 %v401_v12, %s527_s17  ;;  %85 = vrot.lane.b32.xlu1 %v402_v13, %s528_s18  ;;  %s556_s17 = smov 44   ;;  %v447_v12 = vld [vmem:[%s783_s0 + $0x5] sm:$0x1]   ;;  %s575_s18 = smov 6  }
  0x23   :  { %91 = vrot.lane.b32.xlu2 %v403_v14, %s529_s21  ;;  %s567_s21 = smov 22   ;;  %v448_v14 = vld [vmem:[%s783_s0 + $0x4] sm:$0x1]  }
  0x2a   :  { %97 = vrot.lane.b32.xlu0 %v404_v15, %s530_s26  ;;  %103 = vrot.lane.b32.xlu1 %v405_v16, %s531_s27  ;;  %s559_s26 = smov 38  }
  0x2b   :  { %109 = vrot.lane.b32.xlu2 %v406_v17, %s532_s30  ;;  %s570_s30 = smov 16   ;;  %v449_v17 = vld [vmem:[%s783_s0 + $0x3] sm:$0x1]  }
  0x32   :  { %115 = vrot.lane.b32.xlu0 %v407_v18, %s533_s6  ;;  %121 = vrot.lane.b32.xlu1 %v408_v19, %s534_s7  ;;  %s562_s6 = smov 32   ;;  %v450_v18 = vld [vmem:[%s783_s0 + $0x2] sm:$0x1]  }
  0x33   :  { %127 = vrot.lane.b32.xlu2 %v409_v20, %s535_s10  ;;  %s573_s10 = smov 10   ;;  %v451_v20 = vld [vmem:[%s783_s0 + $0x1] sm:$0x1]   ;;  %s577_s0 = smov 2  }
  0x3a   :  { %133 = vrot.lane.b32.xlu0 %v410_v21, %s536_s15  ;;  %139 = vrot.lane.b32.xlu1 %v411_v22, %s537_s16  ;;  %s565_s15 = smov 26  }
  0x3b   :  { %145 = vrot.lane.b32.xlu2 %v412_v23, %s538_s19  ;;  %s547_s19 = smov 62  }
  0x42   :  { %151 = vrot.lane.b32.xlu0 %v413_v24, %s539_s24  ;;  %157 = vrot.lane.b32.xlu1 %v414_v25, %s540_s25  ;;  %s548_s24 = smov 60   ;;  %s549_s25 = smov 58  }
  0x43   :  { %163 = vrot.lane.b32.xlu2 %v415_v26, %s541_s28  ;;  %s550_s28 = smov 56  }
  0x4a   :  { %169 = vrot.lane.b32.xlu0 %v416_v27, %s542_s4  ;;  %175 = vrot.lane.b32.xlu1 %v417_v28, %s543_s5  ;;  %s551_s4 = smov 54   ;;  %s552_s5 = smov 52  }
  0x4b   :  { %181 = vrot.lane.b32.xlu2 %v418_v29, %s544_s8  ;;  %s553_s8 = smov 50  }
  0x52   :  { %187 = vrot.lane.b32.xlu0 %v419_v30, %s545_s13  ;;  %193 = vrot.lane.b32.xlu1 %v420_v31, %s546_s14  ;;  %s554_s13 = smov 48   ;;  %s555_s14 = smov 46  }
  0x53   :  { %199 = vrot.lane.b32.xlu2 %v421_v32, %s547_s19  ;;  %s576_s19 = smov 4  }
  0x5a   :  { %205 = vrot.lane.b32.xlu0 %v422_v34, %s548_s24  ;;  %211 = vrot.lane.b32.xlu1 %v423_v35, %s549_s25  ;;  %s568_s24 = smov 20  }
  0x5b   :  { %217 = vrot.lane.b32.xlu2 %v424_v36, %s550_s28 }
  0x5d   :  { %v32_v39 = vpop.permute.xlu2 %31  }
  0x62   :  { %223 = vrot.lane.b32.xlu0 %v425_v37, %s551_s4  ;;  %229 = vrot.lane.b32.xlu1 %v426_v38, %s552_s5  ;;  %s571_s4 = smov 14  }
  0x63   :  { %235 = vrot.lane.b32.xlu2 %v427_v40, %s553_s8 }
  0x65   :  { %v38_v43 = vpop.permute.xlu2 %37  }
  0x6a   :  { %241 = vrot.lane.b32.xlu0 %v428_v41, %s554_s13  ;;  %247 = vrot.lane.b32.xlu1 %v429_v42, %s555_s14  ;;  %s574_s13 = smov 8  }
  0x6b   :  { %253 = vrot.lane.b32.xlu2 %v430_v44, %s556_s17 }
  0x6d   :  { %v56_v47 = vpop.permute.xlu2 %55  }
  0x72   :  { %259 = vrot.lane.b32.xlu0 %v431_v45, %s557_s22  ;;  %265 = vrot.lane.b32.xlu1 %v432_v46, %s558_s23 }
  0x73   :  { %271 = vrot.lane.b32.xlu2 %v433_v48, %s559_s26 }
  0x74   :  { %v8_v49 = vpop.permute.xlu0 %7   ;;  %v20_v50 = vpop.permute.xlu1 %19  }
  0x75   :  { %10 = vst.msk [vmem:[#allocation0] sm:$0x1] %vm9_vm1, %v8_v49   ;;  %v74_v53 = vpop.permute.xlu2 %73   ;;  %vm105_vm1 = vcmask 786160  }
  0x7a   :  { %277 = vrot.lane.b32.xlu0 %v434_v51, %s560_s2  ;;  %283 = vrot.lane.b32.xlu1 %v435_v52, %s561_s3 }
  0x7b   :  { %289 = vrot.lane.b32.xlu2 %v436_v54, %s562_s6 }
  0x7c   :  { %v14_v55 = vpop.permute.xlu0 %13   ;;  %v26_v56 = vpop.permute.xlu1 %25  }
  0x7d   :  { %16 = vst.msk [vmem:[#allocation0] sm:$0x1] %vm15_vm2, %v14_v55   ;;  %v92_v59 = vpop.permute.xlu2 %91   ;;  %vm111_vm2 = vcmask 769760  }
  0x7e   :  { %22 = vst.msk [vmem:[#allocation0] sm:$0x1] %vm21_vm3, %v20_v50   ;;  %vm117_vm3 = vcmask 753360  }
  0x7f   :  { %28 = vst.msk [vmem:[#allocation0] sm:$0x1] %vm27_vm4, %v26_v56   ;;  %vm123_vm4 = vcmask 736960  }
  0x80   :  { %34 = vst.msk [vmem:[#allocation0] sm:$0x1] %vm33_vm5, %v32_v39   ;;  %vm129_vm5 = vcmask 720560  }
  0x81   :  { %40 = vst.msk [vmem:[#allocation0] sm:$0x1] %vm39_vm6, %v38_v43   ;;  %vm135_vm6 = vcmask 704160  }
  0x82   :  { %295 = vrot.lane.b32.xlu0 %v437_v57, %s563_s11  ;;  %301 = vrot.lane.b32.xlu1 %v438_v58, %s564_s12 }
  0x83   :  { %307 = vrot.lane.b32.xlu2 %v439_v60, %s565_s15 }
  0x84   :  { %v44_v61 = vpop.permute.xlu0 %43   ;;  %v50_v62 = vpop.permute.xlu1 %49  }
  0x85   :  { %46 = vst.msk [vmem:[#allocation0] sm:$0x1] %vm45_vm7, %v44_v61   ;;  %v110_v1 = vpop.permute.xlu2 %109   ;;  %vm141_vm7 = vcmask 687760  }
  0x86   :  { %52 = vst.msk [vmem:[#allocation0] sm:$0x1] %vm51_vm8, %v50_v62   ;;  %vm147_vm8 = vcmask 671360  }
  0x87   :  { %58 = vst.msk [vmem:[#allocation0] sm:$0x1] %vm57_vm9, %v56_v47   ;;  %vm153_vm9 = vcmask 654960  }
  0x8a   :  { %313 = vrot.lane.b32.xlu0 %v440_v63, %s566_s20  ;;  %319 = vrot.lane.b32.xlu1 %v441_v0, %s567_s21 }
  0x8b   :  { %325 = vrot.lane.b32.xlu2 %v442_v2, %s568_s24 }
  0x8c   :  { %v62_v3 = vpop.permute.xlu0 %61   ;;  %v68_v4 = vpop.permute.xlu1 %67  }
  0x8d   :  { %64 = vst.msk [vmem:[#allocation0] sm:$0x1] %vm63_vm10, %v62_v3   ;;  %v128_v7 = vpop.permute.xlu2 %127   ;;  %vm159_vm10 = vcmask 638560  }
  0x8e   :  { %70 = vst.msk [vmem:[#allocation0] sm:$0x1] %vm69_vm11, %v68_v4   ;;  %vm165_vm11 = vcmask 622160  }
  0x8f   :  { %76 = vst.msk [vmem:[#allocation0] sm:$0x1] %vm75_vm12, %v74_v53   ;;  %vm171_vm12 = vcmask 605760  }
  0x92   :  { %331 = vrot.lane.b32.xlu0 %v443_v5, %s569_s29  ;;  %337 = vrot.lane.b32.xlu1 %v444_v6, %s570_s30 }
  0x93   :  { %343 = vrot.lane.b32.xlu2 %v445_v8, %s571_s4 }
  0x94   :  { %v80_v9 = vpop.permute.xlu0 %79   ;;  %v86_v10 = vpop.permute.xlu1 %85  }
  0x95   :  { %82 = vst.msk [vmem:[#allocation0] sm:$0x1] %vm81_vm13, %v80_v9   ;;  %v146_v13 = vpop.permute.xlu2 %145   ;;  %vm177_vm13 = vcmask 589360  }
  0x96   :  { %88 = vst.msk [vmem:[#allocation0] sm:$0x1] %vm87_vm14, %v86_v10   ;;  %vm183_vm14 = vcmask 572960  }
  0x97   :  { %94 = vst.msk [vmem:[#allocation0] sm:$0x1] %vm93_vm15, %v92_v59   ;;  %vm189_vm15 = vcmask 556560  }
  0x9a   :  { %349 = vrot.lane.b32.xlu0 %v446_v11, %s572_s9  ;;  %355 = vrot.lane.b32.xlu1 %v447_v12, %s573_s10 }
  0x9b   :  { %361 = vrot.lane.b32.xlu2 %v448_v14, %s574_s13 }
  0x9c   :  { %v98_v15 = vpop.permute.xlu0 %97   ;;  %v104_v16 = vpop.permute.xlu1 %103  }
  0x9d   :  { %100 = vst.msk [vmem:[#allocation0] sm:$0x1] %vm99_vm0, %v98_v15   ;;  %v164_v19 = vpop.permute.xlu2 %163   ;;  %vm195_vm0 = vcmask 540160  }
  0x9e   :  { %106 = vst.msk [vmem:[#allocation0] sm:$0x1] %vm105_vm1, %v104_v16   ;;  %vm201_vm1 = vcmask 523760  }
  0x9f   :  { %112 = vst.msk [vmem:[#allocation0] sm:$0x1] %vm111_vm2, %v110_v1   ;;  %vm207_vm2 = vcmask 507360  }
  0xa2   :  { %367 = vrot.lane.b32.xlu0 %v449_v17, %s575_s18  ;;  %373 = vrot.lane.b32.xlu1 %v450_v18, %s576_s19 }
  0xa3   :  { %379 = vrot.lane.b32.xlu2 %v451_v20, %s577_s0 }
  0xa4   :  { %v116_v21 = vpop.permute.xlu0 %115   ;;  %v122_v22 = vpop.permute.xlu1 %121  }
  0xa5   :  { %118 = vst.msk [vmem:[#allocation0] sm:$0x1] %vm117_vm3, %v116_v21   ;;  %v182_v23 = vpop.permute.xlu2 %181   ;;  %vm213_vm3 = vcmask 490960  }
  0xa6   :  { %124 = vst.msk [vmem:[#allocation0] sm:$0x1] %vm123_vm4, %v122_v22   ;;  %vm219_vm4 = vcmask 474560  }
  0xa7   :  { %130 = vst.msk [vmem:[#allocation0] sm:$0x1] %vm129_vm5, %v128_v7   ;;  %vm225_vm5 = vcmask 458160  }
  0xac   :  { %v134_v24 = vpop.permute.xlu0 %133   ;;  %v140_v25 = vpop.permute.xlu1 %139  }
  0xad   :  { %136 = vst.msk [vmem:[#allocation0] sm:$0x1] %vm135_vm6, %v134_v24   ;;  %v200_v26 = vpop.permute.xlu2 %199   ;;  %vm231_vm6 = vcmask 441760  }
  0xae   :  { %142 = vst.msk [vmem:[#allocation0] sm:$0x1] %vm141_vm7, %v140_v25   ;;  %vm237_vm7 = vcmask 425360  }
  0xaf   :  { %148 = vst.msk [vmem:[#allocation0] sm:$0x1] %vm147_vm8, %v146_v13   ;;  %vm243_vm8 = vcmask 408960  }
  0xb4   :  { %v152_v27 = vpop.permute.xlu0 %151   ;;  %v158_v28 = vpop.permute.xlu1 %157  }
  0xb5   :  { %154 = vst.msk [vmem:[#allocation0] sm:$0x1] %vm153_vm9, %v152_v27   ;;  %v218_v29 = vpop.permute.xlu2 %217   ;;  %vm249_vm9 = vcmask 392560  }
  0xb6   :  { %160 = vst.msk [vmem:[#allocation0] sm:$0x1] %vm159_vm10, %v158_v28   ;;  %vm255_vm10 = vcmask 376160  }
  0xb7   :  { %166 = vst.msk [vmem:[#allocation0] sm:$0x1] %vm165_vm11, %v164_v19   ;;  %vm261_vm11 = vcmask 359760  }
  0xbc   :  { %v170_v30 = vpop.permute.xlu0 %169   ;;  %v176_v31 = vpop.permute.xlu1 %175  }
  0xbd   :  { %172 = vst.msk [vmem:[#allocation0] sm:$0x1] %vm171_vm12, %v170_v30   ;;  %v236_v32 = vpop.permute.xlu2 %235   ;;  %vm267_vm12 = vcmask 343360  }
  0xbe   :  { %178 = vst.msk [vmem:[#allocation0] sm:$0x1] %vm177_vm13, %v176_v31   ;;  %vm273_vm13 = vcmask 326960  }
  0xbf   :  { %184 = vst.msk [vmem:[#allocation0] sm:$0x1] %vm183_vm14, %v182_v23   ;;  %vm279_vm14 = vcmask 310560  }
  0xc4   :  { %v188_v33 = vpop.permute.xlu0 %187   ;;  %v194_v34 = vpop.permute.xlu1 %193  }
  0xc5   :  { %190 = vst.msk [vmem:[#allocation0] sm:$0x1] %vm189_vm15, %v188_v33   ;;  %v254_v35 = vpop.permute.xlu2 %253   ;;  %vm285_vm15 = vcmask 294160  }
  0xc6   :  { %196 = vst.msk [vmem:[#allocation0] sm:$0x1] %vm195_vm0, %v194_v34   ;;  %vm291_vm0 = vcmask 277760  }
  0xc7   :  { %202 = vst.msk [vmem:[#allocation0] sm:$0x1] %vm201_vm1, %v200_v26   ;;  %vm297_vm1 = vcmask 261360  }
  0xcc   :  { %v206_v36 = vpop.permute.xlu0 %205   ;;  %v212_v37 = vpop.permute.xlu1 %211  }
  0xcd   :  { %208 = vst.msk [vmem:[#allocation0] sm:$0x1] %vm207_vm2, %v206_v36   ;;  %v272_v38 = vpop.permute.xlu2 %271   ;;  %vm303_vm2 = vcmask 244960  }
  0xce   :  { %214 = vst.msk [vmem:[#allocation0] sm:$0x1] %vm213_vm3, %v212_v37   ;;  %vm309_vm3 = vcmask 228560  }
  0xcf   :  { %220 = vst.msk [vmem:[#allocation0] sm:$0x1] %vm219_vm4, %v218_v29   ;;  %vm315_vm4 = vcmask 212160  }
  0xd4   :  { %v224_v39 = vpop.permute.xlu0 %223   ;;  %v230_v40 = vpop.permute.xlu1 %229  }
  0xd5   :  { %226 = vst.msk [vmem:[#allocation0] sm:$0x1] %vm225_vm5, %v224_v39   ;;  %v290_v41 = vpop.permute.xlu2 %289   ;;  %vm321_vm5 = vcmask 195760  }
  0xd6   :  { %232 = vst.msk [vmem:[#allocation0] sm:$0x1] %vm231_vm6, %v230_v40   ;;  %vm327_vm6 = vcmask 179360  }
  0xd7   :  { %238 = vst.msk [vmem:[#allocation0] sm:$0x1] %vm237_vm7, %v236_v32   ;;  %vm333_vm7 = vcmask 162960  }
  0xdc   :  { %v242_v42 = vpop.permute.xlu0 %241   ;;  %v248_v43 = vpop.permute.xlu1 %247  }
  0xdd   :  { %244 = vst.msk [vmem:[#allocation0] sm:$0x1] %vm243_vm8, %v242_v42   ;;  %v308_v44 = vpop.permute.xlu2 %307   ;;  %vm339_vm8 = vcmask 146560  }
  0xde   :  { %250 = vst.msk [vmem:[#allocation0] sm:$0x1] %vm249_vm9, %v248_v43   ;;  %vm345_vm9 = vcmask 130160  }
  0xdf   :  { %256 = vst.msk [vmem:[#allocation0] sm:$0x1] %vm255_vm10, %v254_v35   ;;  %vm351_vm10 = vcmask 113760  }
  0xe4   :  { %v260_v45 = vpop.permute.xlu0 %259   ;;  %v266_v46 = vpop.permute.xlu1 %265  }
  0xe5   :  { %262 = vst.msk [vmem:[#allocation0] sm:$0x1] %vm261_vm11, %v260_v45   ;;  %v326_v47 = vpop.permute.xlu2 %325   ;;  %vm357_vm11 = vcmask 97360  }
  0xe6   :  { %268 = vst.msk [vmem:[#allocation0] sm:$0x1] %vm267_vm12, %v266_v46   ;;  %vm363_vm12 = vcmask 80960  }
  0xe7   :  { %274 = vst.msk [vmem:[#allocation0] sm:$0x1] %vm273_vm13, %v272_v38   ;;  %vm369_vm13 = vcmask 64560  }
  0xec   :  { %v278_v48 = vpop.permute.xlu0 %277   ;;  %v284_v49 = vpop.permute.xlu1 %283  }
  0xed   :  { %280 = vst.msk [vmem:[#allocation0] sm:$0x1] %vm279_vm14, %v278_v48   ;;  %v344_v50 = vpop.permute.xlu2 %343   ;;  %vm375_vm14 = vcmask 48160  }
  0xee   :  { %286 = vst.msk [vmem:[#allocation0] sm:$0x1] %vm285_vm15, %v284_v49   ;;  %vm381_vm15 = vcmask 31760  }
  0xef   :  { %292 = vst.msk [vmem:[#allocation0] sm:$0x1] %vm291_vm0, %v290_v41  }
  0xf4   :  { %v296_v51 = vpop.permute.xlu0 %295   ;;  %v302_v52 = vpop.permute.xlu1 %301  }
  0xf5   :  { %298 = vst.msk [vmem:[#allocation0] sm:$0x1] %vm297_vm1, %v296_v51   ;;  %v362_v53 = vpop.permute.xlu2 %361  }
  0xf6   :  { %304 = vst.msk [vmem:[#allocation0] sm:$0x1] %vm303_vm2, %v302_v52  }
  0xf7   :  { %310 = vst.msk [vmem:[#allocation0] sm:$0x1] %vm309_vm3, %v308_v44  }
  0xfc   :  { %v314_v54 = vpop.permute.xlu0 %313   ;;  %v320_v55 = vpop.permute.xlu1 %319  }
  0xfd   :  { %316 = vst.msk [vmem:[#allocation0] sm:$0x1] %vm315_vm4, %v314_v54   ;;  %v380_v56 = vpop.permute.xlu2 %379  }
  0xfe   :  { %322 = vst.msk [vmem:[#allocation0] sm:$0x1] %vm321_vm5, %v320_v55  }
  0xff   :  { %328 = vst.msk [vmem:[#allocation0] sm:$0x1] %vm327_vm6, %v326_v47  }
 0x104   :  { %v332_v57 = vpop.permute.xlu0 %331   ;;  %v338_v58 = vpop.permute.xlu1 %337  }
 0x105   :  { %334 = vst.msk [vmem:[#allocation0] sm:$0x1] %vm333_vm7, %v332_v57  }
 0x106   :  { %340 = vst.msk [vmem:[#allocation0] sm:$0x1] %vm339_vm8, %v338_v58  }
 0x107   :  { %346 = vst.msk [vmem:[#allocation0] sm:$0x1] %vm345_vm9, %v344_v50  }
 0x10c   :  { %v350_v59 = vpop.permute.xlu0 %349   ;;  %v356_v60 = vpop.permute.xlu1 %355  }
 0x10d   :  { %352 = vst.msk [vmem:[#allocation0] sm:$0x1] %vm351_vm10, %v350_v59  }
 0x10e   :  { %358 = vst.msk [vmem:[#allocation0] sm:$0x1] %vm357_vm11, %v356_v60  }
 0x10f   :  { %364 = vst.msk [vmem:[#allocation0] sm:$0x1] %vm363_vm12, %v362_v53  }
 0x114   :  { %v368_v61 = vpop.permute.xlu0 %367   ;;  %v374_v62 = vpop.permute.xlu1 %373  }
 0x115   :  { %370 = vst.msk [vmem:[#allocation0] sm:$0x1] %vm369_vm13, %v368_v61  }
 0x116   :  { %376 = vst.msk [vmem:[#allocation0] sm:$0x1] %vm375_vm14, %v374_v62  }
 0x117   :  { %382 = vst.msk [vmem:[#allocation0] sm:$0x1] %vm381_vm15, %v380_v56  }
 0x11e   :  { %v385_v63 = vld [vmem:[#allocation0] sm:$0x1] }
 0x11f   :  { %388 = vst [vmem:[%s784_s1] sm:$0x1] %v385_v63 }

// kernel: net_forward.1
= control target key start
LH: loop header
LB: loop body
LE: loop exit
PB: predicated region body
PF: predicated region fallthrough
CT: control target
= control target key end

     0   :  { %s589_s1 = inlined_call_operand.vmem [shape: f32[256,256], index: 1, kind: input, shape index: {}]   ;;  %s590_s0 = inlined_call_operand.vmem [shape: f32[8,256], index: 0, kind: input, shape index: {}]   ;;  %s591_s3 = inlined_call_operand.vmem [shape: f32[256,128], index: 3, kind: input, shape index: {}]   ;;  %s592_s4 = inlined_call_operand.vmem [shape: f32[1,128], index: 4, kind: input, shape index: {}]   ;;  %s593_s2 = inlined_call_operand.vmem [shape: f32[1,256], index: 2, kind: input, shape index: {}]   ;;  %s594_s5 = inlined_call_operand.vmem [shape: f32[8,128], index: 5, kind: output, shape index: {}]  }
   0x1   :  { %v53_v0 = vld [vmem:[%s589_s1 + $0xf8] sm:$0xff]  ;;  %v51_v1 = vld [vmem:[%s589_s1 + $0xe8] sm:$0xff]  ;;  %v52_v3 = vld [vmem:[%s589_s1 + $0xf0] sm:$0xff] }
   0x2   :  { %v85_v2 = vld [vmem:[%s589_s1 + $0x1f8] sm:$0xff]  ;;  %132 = vmatpush.msra.mxu2 %v53_v0  ;;  %v83_v4 = vld [vmem:[%s589_s1 + $0x1e8] sm:$0xff]  ;;  %92 = vmatpush.msra.mxu0 %v52_v3  ;;  %v50_v6 = vld [vmem:[%s589_s1 + $0xe0] sm:$0xff] }
   0x3   :  { %152 = vmatpush.msra.mxu3 %v85_v2  ;;  %v49_v5 = vld [vmem:[%s589_s1 + $0xd8] sm:$0xff]  ;;  %v84_v7 = vld [vmem:[%s589_s1 + $0x1f0] sm:$0xff]  ;;  %v82_v10 = vld [vmem:[%s589_s1 + $0x1e0] sm:$0xff] }
   0x4   :  { %133 = vmatpush.msra.mxu2 %v51_v1  ;;  %v81_v8 = vld [vmem:[%s589_s1 + $0x1d8] sm:$0xff]  ;;  %v48_v9 = vld [vmem:[%s589_s1 + $0xd0] sm:$0xff]  ;;  %93 = vmatpush.msra.mxu0 %v50_v6  ;;  %v47_v11 = vld [vmem:[%s589_s1 + $0xc8] sm:$0xff] }
   0x5   :  { %153 = vmatpush.msra.mxu3 %v83_v4  ;;  %112 = vmatpush.msra.mxu1 %v84_v7  ;;  %v79_v12 = vld [vmem:[%s589_s1 + $0x1c8] sm:$0xff]  ;;  %v46_v13 = vld [vmem:[%s589_s1 + $0xc0] sm:$0xff]  ;;  %v80_v14 = vld [vmem:[%s589_s1 + $0x1d0] sm:$0xff] }
   0x6   :  { %134 = vmatpush.msra.mxu2 %v49_v5  ;;  %94 = vmatpush.msra.mxu0 %v48_v9  ;;  %v45_v15 = vld [vmem:[%s589_s1 + $0xb8] sm:$0xff]  ;;  %v44_v17 = vld [vmem:[%s589_s1 + $0xb0] sm:$0xff]  ;;  %v78_v18 = vld [vmem:[%s589_s1 + $0x1c0] sm:$0xff] }
   0x7   :  { %154 = vmatpush.msra.mxu3 %v81_v8  ;;  %113 = vmatpush.msra.mxu1 %v82_v10  ;;  %v77_v16 = vld [vmem:[%s589_s1 + $0x1b8] sm:$0xff]  ;;  %v43_v19 = vld [vmem:[%s589_s1 + $0xa8] sm:$0xff]  ;;  %v42_v21 = vld [vmem:[%s589_s1 + $0xa0] sm:$0xff] }
   0x8   :  { %135 = vmatpush.msra.mxu2 %v47_v11  ;;  %95 = vmatpush.msra.mxu0 %v46_v13  ;;  %v75_v20 = vld [vmem:[%s589_s1 + $0x1a8] sm:$0xff]  ;;  %v76_v22 = vld [vmem:[%s589_s1 + $0x1b0] sm:$0xff]  ;;  %v41_v23 = vld [vmem:[%s589_s1 + $0x98] sm:$0xff] }
   0x9   :  { %155 = vmatpush.msra.mxu3 %v79_v12  ;;  %114 = vmatpush.msra.mxu1 %v80_v14  ;;  %v73_v24 = vld [vmem:[%s589_s1 + $0x198] sm:$0xff]  ;;  %v40_v25 = vld [vmem:[%s589_s1 + $0x90] sm:$0xff]  ;;  %v74_v26 = vld [vmem:[%s589_s1 + $0x1a0] sm:$0xff] }
   0xa   :  { %136 = vmatpush.msra.mxu2 %v45_v15  ;;  %96 = vmatpush.msra.mxu0 %v44_v17  ;;  %v39_v27 = vld [vmem:[%s589_s1 + $0x88] sm:$0xff]  ;;  %v38_v29 = vld [vmem:[%s589_s1 + $0x80] sm:$0xff]  ;;  %v72_v30 = vld [vmem:[%s589_s1 + $0x190] sm:$0xff] }
   0xb   :  { %156 = vmatpush.msra.mxu3 %v77_v16  ;;  %115 = vmatpush.msra.mxu1 %v78_v18  ;;  %v71_v28 = vld [vmem:[%s589_s1 + $0x188] sm:$0xff]  ;;  %v37_v31 = vld [vmem:[%s589_s1 + $0x78] sm:$0xff]  ;;  %v36_v33 = vld [vmem:[%s589_s1 + $0x70] sm:$0xff] }
   0xc   :  { %137 = vmatpush.msra.mxu2 %v43_v19  ;;  %97 = vmatpush.msra.mxu0 %v42_v21  ;;  %v69_v32 = vld [vmem:[%s589_s1 + $0x178] sm:$0xff]  ;;  %v70_v34 = vld [vmem:[%s589_s1 + $0x180] sm:$0xff]  ;;  %v35_v35 = vld [vmem:[%s589_s1 + $0x68] sm:$0xff] }
   0xd   :  { %157 = vmatpush.msra.mxu3 %v75_v20  ;;  %116 = vmatpush.msra.mxu1 %v76_v22  ;;  %v67_v36 = vld [vmem:[%s589_s1 + $0x168] sm:$0xff]  ;;  %v34_v37 = vld [vmem:[%s589_s1 + $0x60] sm:$0xff]  ;;  %v68_v38 = vld [vmem:[%s589_s1 + $0x170] sm:$0xff] }
   0xe   :  { %138 = vmatpush.msra.mxu2 %v41_v23  ;;  %98 = vmatpush.msra.mxu0 %v40_v25  ;;  %v33_v39 = vld [vmem:[%s589_s1 + $0x58] sm:$0xff]  ;;  %v32_v41 = vld [vmem:[%s589_s1 + $0x50] sm:$0xff]  ;;  %v66_v42 = vld [vmem:[%s589_s1 + $0x160] sm:$0xff] }
   0xf   :  { %158 = vmatpush.msra.mxu3 %v73_v24  ;;  %117 = vmatpush.msra.mxu1 %v74_v26  ;;  %v65_v40 = vld [vmem:[%s589_s1 + $0x158] sm:$0xff]  ;;  %v31_v43 = vld [vmem:[%s589_s1 + $0x48] sm:$0xff]  ;;  %v30_v45 = vld [vmem:[%s589_s1 + $0x40] sm:$0xff] }
  0x10   :  { %139 = vmatpush.msra.mxu2 %v39_v27  ;;  %99 = vmatpush.msra.mxu0 %v38_v29  ;;  %v63_v44 = vld [vmem:[%s589_s1 + $0x148] sm:$0xff]  ;;  %v64_v46 = vld [vmem:[%s589_s1 + $0x150] sm:$0xff]  ;;  %v29_v47 = vld [vmem:[%s589_s1 + $0x38] sm:$0xff] }
  0x11   :  { %159 = vmatpush.msra.mxu3 %v71_v28  ;;  %118 = vmatpush.msra.mxu1 %v72_v30  ;;  %v61_v48 = vld [vmem:[%s589_s1 + $0x138] sm:$0xff]  ;;  %v28_v49 = vld [vmem:[%s589_s1 + $0x30] sm:$0xff]  ;;  %v62_v50 = vld [vmem:[%s589_s1 + $0x140] sm:$0xff] }
  0x12   :  { %140 = vmatpush.msra.mxu2 %v37_v31  ;;  %100 = vmatpush.msra.mxu0 %v36_v33  ;;  %v27_v51 = vld [vmem:[%s589_s1 + $0x28] sm:$0xff]  ;;  %v26_v53 = vld [vmem:[%s589_s1 + $0x20] sm:$0xff]  ;;  %v60_v54 = vld [vmem:[%s589_s1 + $0x130] sm:$0xff] }
  0x13   :  { %160 = vmatpush.msra.mxu3 %v69_v32  ;;  %119 = vmatpush.msra.mxu1 %v70_v34  ;;  %v59_v52 = vld [vmem:[%s589_s1 + $0x128] sm:$0xff]  ;;  %v25_v55 = vld [vmem:[%s589_s1 + $0x18] sm:$0xff]  ;;  %v24_v57 = vld [vmem:[%s589_s1 + $0x10] sm:$0xff] }
  0x14   :  { %141 = vmatpush.msra.mxu2 %v35_v35  ;;  %101 = vmatpush.msra.mxu0 %v34_v37  ;;  %v57_v56 = vld [vmem:[%s589_s1 + $0x118] sm:$0xff]  ;;  %v58_v58 = vld [vmem:[%s589_s1 + $0x120] sm:$0xff]  ;;  %v23_v59 = vld [vmem:[%s589_s1 + $0x8] sm:$0xff] }
  0x15   :  { %161 = vmatpush.msra.mxu3 %v67_v36  ;;  %120 = vmatpush.msra.mxu1 %v68_v38  ;;  %v55_v60 = vld [vmem:[%s589_s1 + $0x108] sm:$0xff]  ;;  %v20_v61 = vld [vmem:[%s590_s0] sm:$0xff]  ;;  %v56_v0 = vld [vmem:[%s589_s1 + $0x110] sm:$0xff] }
  0x16   :  { %142 = vmatpush.msra.mxu2 %v33_v39  ;;  %102 = vmatpush.msra.mxu0 %v32_v41  ;;  %v21_v62 = vld [vmem:[%s590_s0 + $0x8] sm:$0xff]  ;;  %v22_v63 = vld [vmem:[%s589_s1] sm:$0xff]  ;;  %v189_v2 = vld [vmem:[%s591_s3 + $0x78] sm:$0xff] }
  0x17   :  { %162 = vmatpush.msra.mxu3 %v65_v40  ;;  %121 = vmatpush.msra.mxu1 %v66_v42  ;;  %v54_v1 = vld [vmem:[%s589_s1 + $0x100] sm:$0xff]  ;;  %v188_v3 = vld [vmem:[%s591_s3 + $0x70] sm:$0xff]  ;;  %v205_v4 = vld [vmem:[%s591_s3 + $0xf8] sm:$0xff] }
  0x18   :  { %143 = vmatpush.msra.mxu2 %v31_v43  ;;  %103 = vmatpush.msra.mxu0 %v30_v45  ;;  %v187_v5 = vld [vmem:[%s591_s3 + $0x68] sm:$0xff]  ;;  %v204_v6 = vld [vmem:[%s591_s3 + $0xf0] sm:$0xff]  ;;  %v186_v7 = vld [vmem:[%s591_s3 + $0x60] sm:$0xff] }
  0x19   :  { %163 = vmatpush.msra.mxu3 %v63_v44  ;;  %122 = vmatpush.msra.mxu1 %v64_v46  ;;  %v203_v8 = vld [vmem:[%s591_s3 + $0xe8] sm:$0xff]  ;;  %v185_v9 = vld [vmem:[%s591_s3 + $0x58] sm:$0xff]  ;;  %v202_v10 = vld [vmem:[%s591_s3 + $0xe0] sm:$0xff] }
  0x1a   :  { %144 = vmatpush.msra.mxu2 %v29_v47  ;;  %104 = vmatpush.msra.mxu0 %v28_v49  ;;  %v184_v11 = vld [vmem:[%s591_s3 + $0x50] sm:$0xff]  ;;  %v201_v12 = vld [vmem:[%s591_s3 + $0xd8] sm:$0xff]  ;;  %v183_v13 = vld [vmem:[%s591_s3 + $0x48] sm:$0xff] }
  0x1b   :  { %164 = vmatpush.msra.mxu3 %v61_v48  ;;  %123 = vmatpush.msra.mxu1 %v62_v50  ;;  %v200_v14 = vld [vmem:[%s591_s3 + $0xd0] sm:$0xff]  ;;  %v182_v15 = vld [vmem:[%s591_s3 + $0x40] sm:$0xff]  ;;  %v199_v16 = vld [vmem:[%s591_s3 + $0xc8] sm:$0xff] }
  0x1c   :  { %145 = vmatpush.msra.mxu2 %v27_v51  ;;  %105 = vmatpush.msra.mxu0 %v26_v53  ;;  %v181_v17 = vld [vmem:[%s591_s3 + $0x38] sm:$0xff]  ;;  %v198_v18 = vld [vmem:[%s591_s3 + $0xc0] sm:$0xff]  ;;  %v180_v19 = vld [vmem:[%s591_s3 + $0x30] sm:$0xff] }
  0x1d   :  { %165 = vmatpush.msra.mxu3 %v59_v52  ;;  %124 = vmatpush.msra.mxu1 %v60_v54  ;;  %v197_v20 = vld [vmem:[%s591_s3 + $0xb8] sm:$0xff]  ;;  %v179_v21 = vld [vmem:[%s591_s3 + $0x28] sm:$0xff]  ;;  %v196_v22 = vld [vmem:[%s591_s3 + $0xb0] sm:$0xff] }
  0x1e   :  { %146 = vmatpush.msra.mxu2 %v25_v55  ;;  %106 = vmatpush.msra.mxu0 %v24_v57  ;;  %v178_v23 = vld [vmem:[%s591_s3 + $0x20] sm:$0xff]  ;;  %v195_v24 = vld [vmem:[%s591_s3 + $0xa8] sm:$0xff]  ;;  %v177_v25 = vld [vmem:[%s591_s3 + $0x18] sm:$0xff] }
  0x1f   :  { %166 = vmatpush.msra.mxu3 %v57_v56  ;;  %125 = vmatpush.msra.mxu1 %v58_v58  ;;  %v194_v26 = vld [vmem:[%s591_s3 + $0xa0] sm:$0xff]  ;;  %v176_v27 = vld [vmem:[%s591_s3 + $0x10] sm:$0xff]  ;;  %v193_v28 = vld [vmem:[%s591_s3 + $0x98] sm:$0xff] }
  0x20   :  { %147 = vmatpush.msra.mxu2 %v23_v59  ;;  %107 = vmatpush.msra.mxu0 %v22_v63  ;;  %v175_v29 = vld [vmem:[%s591_s3 + $0x8] sm:$0xff]  ;;  %v192_v30 = vld [vmem:[%s591_s3 + $0x90] sm:$0xff]  ;;  %v174_v31 = vld [vmem:[%s591_s3] sm:$0xff] }
  0x21   :  { %167 = vmatpush.msra.mxu3 %v55_v60  ;;  %148 = vmatmul.f32.vlgmr.msra.gmra.mxu2 %v20_v61  ;;  %v191_v32 = vld [vmem:[%s591_s3 + $0x88] sm:$0xff]  ;;  %v190_v33 = vld [vmem:[%s591_s3 + $0x80] sm:$0xff] }
  0x22   :  { %168 = vmatmul.f32.vlgmr.msra.gmra.mxu3 %v21_v62  ;;  %126 = vmatpush.msra.mxu1 %v56_v0  ;;  %v86_v34 = vld [vmem:[%s593_s2] sm:$0x3] }
  0x23   :  { %108 = vmatmul.f32.vlgmr.msra.gmra.mxu0 %v20_v61  ;;  %v88_v35 = vperm.slane %v86_v34, 0  ;;  %v89_v38 = vperm.slane %v86_v34, 1  ;;  %v255_v47 = vld [vmem:[%s592_s4] ss:$0 sm:$0xff] }
  0x24   :  { %127 = vmatpush.msra.mxu1 %v54_v1  ;;  %210 = vmatpush.msrb.mxu0 %v189_v2 }
  0x25   :  { %128 = vmatmul.f32.vlgmr.msra.gmra.mxu1 %v21_v62 }
  0x26   :  { %211 = vmatpush.msrb.mxu0 %v188_v3  ;;  %230 = vmatpush.msrb.mxu1 %v205_v4 }
  0x28   :  { %212 = vmatpush.msrb.mxu0 %v187_v5  ;;  %231 = vmatpush.msrb.mxu1 %v204_v6 }
  0x2a   :  { %213 = vmatpush.msrb.mxu0 %v186_v7  ;;  %232 = vmatpush.msrb.mxu1 %v203_v8 }
  0x2c   :  { %214 = vmatpush.msrb.mxu0 %v185_v9  ;;  %233 = vmatpush.msrb.mxu1 %v202_v10 }
  0x2e   :  { %215 = vmatpush.msrb.mxu0 %v184_v11  ;;  %234 = vmatpush.msrb.mxu1 %v201_v12 }
  0x30   :  { %216 = vmatpush.msrb.mxu0 %v183_v13  ;;  %235 = vmatpush.msrb.mxu1 %v200_v14 }
  0x32   :  { %217 = vmatpush.msrb.mxu0 %v182_v15  ;;  %236 = vmatpush.msrb.mxu1 %v199_v16 }
  0x34   :  { %218 = vmatpush.msrb.mxu0 %v181_v17  ;;  %237 = vmatpush.msrb.mxu1 %v198_v18 }
  0x36   :  { %219 = vmatpush.msrb.mxu0 %v180_v19  ;;  %238 = vmatpush.msrb.mxu1 %v197_v20 }
  0x38   :  { %220 = vmatpush.msrb.mxu0 %v179_v21  ;;  %239 = vmatpush.msrb.mxu1 %v196_v22 }
  0x3a   :  { %221 = vmatpush.msrb.mxu0 %v178_v23  ;;  %240 = vmatpush.msrb.mxu1 %v195_v24 }
  0x3c   :  { %222 = vmatpush.msrb.mxu0 %v177_v25  ;;  %241 = vmatpush.msrb.mxu1 %v194_v26 }
  0x3e   :  { %223 = vmatpush.msrb.mxu0 %v176_v27  ;;  %242 = vmatpush.msrb.mxu1 %v193_v28 }
  0x40   :  { %224 = vmatpush.msrb.mxu0 %v175_v29  ;;  %243 = vmatpush.msrb.mxu1 %v192_v30 }
  0x42   :  { %225 = vmatpush.msrb.mxu0 %v174_v31  ;;  %244 = vmatpush.msrb.mxu1 %v191_v32 }
  0x44   :  { %245 = vmatpush.msrb.mxu1 %v190_v33 }
  0xa0   :  { %v109_v36 = vpop.f32.mrf.mxu0 }
  0xa1   :  { %v110_v37 = vadd.f32 %v109_v36, %v88_v35 }
  0xa2   :  { %v129_v39 = vpop.f32.mrf.mxu1 }
  0xa3   :  { %v130_v40 = vadd.f32 %v129_v39, %v110_v37 }
  0xa4   :  { %v149_v41 = vpop.f32.mrf.mxu2 }
  0xa5   :  { %v169_v42 = vpop.f32.mrf.mxu3  ;;  %v172_v43 = vmax.f32 %v130_v40, 0.0  ;;  %v150_v44 = vadd.f32 %v149_v41, %v89_v38 }
  0xa7   :  { %v170_v45 = vadd.f32 %v169_v42, %v150_v44  ;;  %226 = vmatmul.f32.vlgmr.msrb.gmra.mxu0 %v172_v43 }
  0xa9   :  { %v173_v46 = vmax.f32 %v170_v45, 0.0 }
  0xab   :  { %246 = vmatmul.f32.vlgmr.msrb.gmra.mxu1 %v173_v46 }
 0x124   :  { %v227_v48 = vpop.f32.mrf.mxu0 }
 0x125   :  { %v228_v49 = vadd.f32 %v255_v47, %v227_v48 }
 0x128   :  { %v247_v50 = vpop.f32.mrf.mxu1 }
 0x129   :  { %v248_v51 = vadd.f32 %v247_v50, %v228_v49 }
 0x12b   :  { %250 = vst [vmem:[%s594_s5] sm:$0xff] %v248_v51 }

</bundles_post_ra>
